<compile_context>
chip_gen: v6e
topology: v6e:2x2x1
jax: 0.10.0
libtpu: 0.0.40
codegen_flags: <defaults>
</compile_context>

<pallas_src>
import functools

import jax
import jax.numpy as jnp
from jax import lax
from jax.experimental import pallas as pl
from jax.experimental.pallas import tpu as pltpu


def _round_up(x, m):
    return ((x + m - 1) // m) * m


def _recall_kernel(t_ref, p_ref, out_ref, tpl_acc, posl_acc, samp_acc,
                   *, n_true, l_true, tile_rows, mask_rows):
    """One grid step processes a (tile_rows, L) block of rows.

    t_ref, p_ref : (tile_rows, L) indicator blocks in VMEM (native dtype).
    out_ref      : (3,) float32 in SMEM -> [macro, micro, samples].
    tpl_acc      : (1, L) int32 VMEM scratch, per-label true positives.
    posl_acc     : (1, L) int32 VMEM scratch, per-label actual positives.
    samp_acc     : (1, 1) float32 VMEM scratch, running sum of per-sample recall.
    """
    pid = pl.program_id(0)
    nsteps = pl.num_programs(0)

    @pl.when(pid == 0)
    def _init():
        tpl_acc[...] = jnp.zeros_like(tpl_acc)
        posl_acc[...] = jnp.zeros_like(posl_acc)
        samp_acc[...] = jnp.zeros_like(samp_acc)

    t_raw = t_ref[...]
    p_raw = p_ref[...]
    if mask_rows:
        # The ragged final block reads past the end of the array (unspecified
        # values); zero those rows before they touch the accumulators.
        row = lax.broadcasted_iota(jnp.int32, (tile_rows, 1), 0) + pid * tile_rows
        valid = row < n_true
        t_raw = jnp.where(valid, t_raw, 0)
        p_raw = jnp.where(valid, p_raw, 0)

    # Widen only inside vregs (exact 0/1 accumulation, no overflow).
    t = t_raw.astype(jnp.int32)        # true labels
    p = p_raw.astype(jnp.int32)        # predicted labels
    tp = t * p                         # elementwise true-positive mask

    # --- per-label partial sums (int32 accumulation across grid steps) ---
    tpl_acc[...] += jnp.sum(tp, axis=0, keepdims=True)
    posl_acc[...] += jnp.sum(t, axis=0, keepdims=True)

    # --- per-sample recall for this block (masked/empty rows -> 0) ---
    tp_n = jnp.sum(tp, axis=1, keepdims=True).astype(jnp.float32)    # (tile, 1)
    pos_n = jnp.sum(t, axis=1, keepdims=True).astype(jnp.float32)    # (tile, 1)
    per_sample = jnp.where(pos_n > 0.0, tp_n / jnp.maximum(pos_n, 1.0), 0.0)
    samp_acc[...] += jnp.sum(per_sample, axis=0, keepdims=True)

    @pl.when(pid == nsteps - 1)
    def _finalize():
        tp_l = tpl_acc[...].astype(jnp.float32)    # (1, L)
        pos_l = posl_acc[...].astype(jnp.float32)  # (1, L)

        # macro: mean over labels (labels with no positives count as 0)
        per_label = jnp.where(pos_l > 0.0, tp_l / jnp.maximum(pos_l, 1.0), 0.0)
        macro = jnp.sum(per_label) / l_true

        # micro: derived from the per-label sums (no second full reduction)
        total_tp = jnp.sum(tp_l)
        total_pos = jnp.sum(pos_l)
        micro = jnp.where(total_pos > 0.0,
                          total_tp / jnp.maximum(total_pos, 1.0), 0.0)

        # samples: mean over the true N rows
        samples = jnp.sum(samp_acc[...]) / n_true

        out_ref[0] = macro
        out_ref[1] = micro
        out_ref[2] = samples


def _choose_tile_rows(n, l, itemsize, *, max_rows=2048, input_vmem_budget=8 << 20):
    """Largest row tile (multiple of 8) whose double-buffered input blocks fit
    the VMEM budget; small inputs collapse to a single full-array block."""
    bytes_per_row = 4 * l * itemsize          # 2 inputs x 2 pipeline buffers
    cap = max(8, (input_vmem_budget // max(bytes_per_row, 1)) // 8 * 8)
    tile = min(_round_up(n, 8), max_rows, cap)
    tile = max(8, (tile // 8) * 8)
    if tile >= n:
        return n                               # single block == full dims
    return tile


def recall_score_pallas(predict_labels, true_labels, *, tile_rows=None):
    """Mirrors Recall_score.forward: returns (macro, micro, samples)."""
    assert predict_labels.shape == true_labels.shape
    n, l = true_labels.shape
    itemsize = jnp.dtype(true_labels.dtype).itemsize

    if tile_rows is None:
        tile = _choose_tile_rows(n, l, itemsize)
    else:
        tile = min(int(tile_rows), n)
        if tile < n:
            tile = max(8, (tile // 8) * 8)

    grid = (-(-n // tile),)
    mask_rows = (n % tile) != 0

    kernel = functools.partial(_recall_kernel,
                               n_true=n, l_true=l,
                               tile_rows=tile, mask_rows=mask_rows)

    # TODO(synk): add a "parallel" grid axis (per-core partial sums reduced in
    # the wrapper) to use v7x's second TensorCore for very large N.
    out = pl.pallas_call(
        kernel,
        out_shape=jax.ShapeDtypeStruct((3,), jnp.float32),
        grid=grid,
        in_specs=[
            pl.BlockSpec((tile, l), lambda i: (i, 0)),  # true labels
            pl.BlockSpec((tile, l), lambda i: (i, 0)),  # predicted labels
        ],
        out_specs=pl.BlockSpec(memory_space=pltpu.SMEM),
        scratch_shapes=[
            pltpu.VMEM((1, l), jnp.int32),   # per-label TP accumulator
            pltpu.VMEM((1, l), jnp.int32),   # per-label positives accumulator
            pltpu.VMEM((1, 1), jnp.float32),  # running sum of per-sample recall
        ],
        compiler_params=pltpu.CompilerParams(
            dimension_semantics=("arbitrary",),
            vmem_limit_bytes=32 * 1024 * 1024,
        ),
    )(true_labels, predict_labels)

    return out[0], out[1], out[2]


def _reference(predict_labels, true_labels):
    """Plain-JAX reference matching sklearn recall_score semantics."""
    t = true_labels.astype(jnp.float32)
    p = predict_labels.astype(jnp.float32)
    tp = t * p
    tp_l, pos_l = tp.sum(0), t.sum(0)
    macro = jnp.mean(jnp.where(pos_l > 0, tp_l / jnp.maximum(pos_l, 1.0), 0.0))
    micro = jnp.where(t.sum() > 0, tp.sum() / jnp.maximum(t.sum(), 1.0), 0.0)
    tp_n, pos_n = tp.sum(1), t.sum(1)
    samples = jnp.mean(jnp.where(pos_n > 0, tp_n / jnp.maximum(pos_n, 1.0), 0.0))
    return macro, micro, samples


if __name__ == "__main__":
    key = jax.random.PRNGKey(0)
    k1, k2, k3, k4 = jax.random.split(key, 4)

    # Case 1: small multilabel indicator batch (8 samples, 16 labels),
    # single-block path.
    t1 = jax.random.bernoulli(k1, p=0.4, shape=(8, 16)).astype(jnp.int32)
    p1 = jax.random.bernoulli(k2, p=0.5, shape=(8, 16)).astype(jnp.int32)
    out1 = recall_score_pallas(p1, t1)
    jax.block_until_ready(out1)
    ref1 = _reference(p1, t1)
    for a, b in zip(out1, ref1):
        assert jnp.allclose(a, b, atol=1e-5), (a, b)

    # Case 2: ragged shapes (N not a multiple of the tile, L not 128-aligned),
    # forced multi-step grid to exercise the masked remainder path.
    t2 = jax.random.bernoulli(k3, p=0.3, shape=(50, 37)).astype(jnp.int32)
    p2 = jax.random.bernoulli(k4, p=0.5, shape=(50, 37)).astype(jnp.int32)
    out2 = recall_score_pallas(p2, t2, tile_rows=16)
    jax.block_until_ready(out2)
    ref2 = _reference(p2, t2)
    for a, b in zip(out2, ref2):
        assert jnp.allclose(a, b, atol=1e-5), (a, b)

    print("KERNEL_OK")
</pallas_src>

<mosaic_0001>
module attributes {stable_mosaic.version = 11 : i64} {
  func.func @_recall_kernel(%arg0: i32, %arg1: memref<8x16xi32, #tpu.memory_space<vmem>>, %arg2: memref<8x16xi32, #tpu.memory_space<vmem>>, %arg3: memref<3xf32, #tpu.memory_space<smem>>, %arg4: memref<1x16xi32, #tpu.memory_space<vmem>>, %arg5: memref<1x16xi32, #tpu.memory_space<vmem>>, %arg6: memref<1x1xf32, #tpu.memory_space<vmem>>) attributes {dimension_semantics = [#tpu.dimension_semantics<arbitrary>], iteration_bounds = array<i64: 1>, scalar_prefetch = 0 : i64, scratch_operands = 3 : i64, tpu.core_type = #tpu.core_type<tc>, window_params = [{transform_indices = @transform_0, window_bounds = array<i64: 8, 16>}, {transform_indices = @transform_1, window_bounds = array<i64: 8, 16>}, {transform_indices = @transform_2, window_bounds = array<i64: 3>}]} {
    %c0_i32 = arith.constant 0 : i32
    %0 = arith.cmpi eq, %arg0, %c0_i32 : i32
    %1 = arith.extui %0 : i1 to i32
    %c0_i32_0 = arith.constant 0 : i32
    %2 = arith.cmpi ne, %1, %c0_i32_0 : i32
    scf.if %2 {
      %c0_i32_25 = arith.constant 0 : i32
      %37 = vector.broadcast %c0_i32_25 : i32 to vector<1x16xi32>
      %c0_26 = arith.constant 0 : index
      %c0_27 = arith.constant 0 : index
      %38 = vector.load %arg4[%c0_26, %c0_27] : memref<1x16xi32, #tpu.memory_space<vmem>>, vector<1x16xi32>
      tpu.vector_store %arg4[%c0_26, %c0_27], %37 {strides = array<i32>} : memref<1x16xi32, #tpu.memory_space<vmem>>, vector<1x16xi32>,
      %c0_i32_28 = arith.constant 0 : i32
      %39 = vector.broadcast %c0_i32_28 : i32 to vector<1x16xi32>
      %c0_29 = arith.constant 0 : index
      %c0_30 = arith.constant 0 : index
      %40 = vector.load %arg5[%c0_29, %c0_30] : memref<1x16xi32, #tpu.memory_space<vmem>>, vector<1x16xi32>
      tpu.vector_store %arg5[%c0_29, %c0_30], %39 {strides = array<i32>} : memref<1x16xi32, #tpu.memory_space<vmem>>, vector<1x16xi32>,
      %cst_31 = arith.constant 0.000000e+00 : f32
      %41 = vector.broadcast %cst_31 : f32 to vector<1x1xf32>
      %c0_32 = arith.constant 0 : index
      %c0_33 = arith.constant 0 : index
      %42 = vector.load %arg6[%c0_32, %c0_33] : memref<1x1xf32, #tpu.memory_space<vmem>>, vector<1x1xf32>
      tpu.vector_store %arg6[%c0_32, %c0_33], %41 {strides = array<i32>} : memref<1x1xf32, #tpu.memory_space<vmem>>, vector<1x1xf32>,
    } else {
    }
    %c0 = arith.constant 0 : index
    %c0_1 = arith.constant 0 : index
    %3 = vector.load %arg1[%c0, %c0_1] : memref<8x16xi32, #tpu.memory_space<vmem>>, vector<8x16xi32>
    %c0_2 = arith.constant 0 : index
    %c0_3 = arith.constant 0 : index
    %4 = vector.load %arg2[%c0_2, %c0_3] : memref<8x16xi32, #tpu.memory_space<vmem>>, vector<8x16xi32>
    %5 = arith.muli %3, %4 : vector<8x16xi32>
    %c0_4 = arith.constant 0 : index
    %c0_5 = arith.constant 0 : index
    %6 = vector.load %arg4[%c0_4, %c0_5] : memref<1x16xi32, #tpu.memory_space<vmem>>, vector<1x16xi32>
    %cst = arith.constant dense<0> : vector<16xi32>
    %7 = vector.multi_reduction <add>, %5, %cst [0] : vector<8x16xi32> to vector<16xi32>
    %8 = vector.shape_cast %7 : vector<16xi32> to vector<1x16xi32>
    %9 = arith.addi %6, %8 : vector<1x16xi32>
    %c0_6 = arith.constant 0 : index
    %c0_7 = arith.constant 0 : index
    %10 = vector.load %arg4[%c0_6, %c0_7] : memref<1x16xi32, #tpu.memory_space<vmem>>, vector<1x16xi32>
    tpu.vector_store %arg4[%c0_6, %c0_7], %9 {strides = array<i32>} : memref<1x16xi32, #tpu.memory_space<vmem>>, vector<1x16xi32>,
    %c0_8 = arith.constant 0 : index
    %c0_9 = arith.constant 0 : index
    %11 = vector.load %arg5[%c0_8, %c0_9] : memref<1x16xi32, #tpu.memory_space<vmem>>, vector<1x16xi32>
    %cst_10 = arith.constant dense<0> : vector<16xi32>
    %12 = vector.multi_reduction <add>, %3, %cst_10 [0] : vector<8x16xi32> to vector<16xi32>
    %13 = vector.shape_cast %12 : vector<16xi32> to vector<1x16xi32>
    %14 = arith.addi %11, %13 : vector<1x16xi32>
    %c0_11 = arith.constant 0 : index
    %c0_12 = arith.constant 0 : index
    %15 = vector.load %arg5[%c0_11, %c0_12] : memref<1x16xi32, #tpu.memory_space<vmem>>, vector<1x16xi32>
    tpu.vector_store %arg5[%c0_11, %c0_12], %14 {strides = array<i32>} : memref<1x16xi32, #tpu.memory_space<vmem>>, vector<1x16xi32>,
    %cst_13 = arith.constant dense<0> : vector<8xi32>
    %16 = vector.multi_reduction <add>, %5, %cst_13 [1] : vector<8x16xi32> to vector<8xi32>
    %17 = vector.shape_cast %16 : vector<8xi32> to vector<8x1xi32>
    %18 = arith.sitofp %17 : vector<8x1xi32> to vector<8x1xf32>
    %cst_14 = arith.constant dense<0> : vector<8xi32>
    %19 = vector.multi_reduction <add>, %3, %cst_14 [1] : vector<8x16xi32> to vector<8xi32>
    %20 = vector.shape_cast %19 : vector<8xi32> to vector<8x1xi32>
    %21 = arith.sitofp %20 : vector<8x1xi32> to vector<8x1xf32>
    %cst_15 = arith.constant 0.000000e+00 : f32
    %22 = vector.broadcast %cst_15 : f32 to vector<8x1xf32>
    %23 = arith.cmpf ogt, %21, %22 : vector<8x1xf32>
    %cst_16 = arith.constant 1.000000e+00 : f32
    %24 = vector.broadcast %cst_16 : f32 to vector<8x1xf32>
    %25 = arith.maximumf %21, %24 : vector<8x1xf32>
    %26 = arith.divf %18, %25 : vector<8x1xf32>
    %cst_17 = arith.constant 0.000000e+00 : f32
    %27 = vector.broadcast %cst_17 : f32 to vector<8x1xf32>
    %28 = arith.select %23, %26, %27 : vector<8x1xi1>, vector<8x1xf32>
    %c0_18 = arith.constant 0 : index
    %c0_19 = arith.constant 0 : index
    %29 = vector.load %arg6[%c0_18, %c0_19] : memref<1x1xf32, #tpu.memory_space<vmem>>, vector<1x1xf32>
    %cst_20 = arith.constant dense<0.000000e+00> : vector<1xf32>
    %30 = vector.multi_reduction <add>, %28, %cst_20 [0] : vector<8x1xf32> to vector<1xf32>
    %31 = vector.shape_cast %30 : vector<1xf32> to vector<1x1xf32>
    %32 = arith.addf %29, %31 : vector<1x1xf32>
    %c0_21 = arith.constant 0 : index
    %c0_22 = arith.constant 0 : index
    %33 = vector.load %arg6[%c0_21, %c0_22] : memref<1x1xf32, #tpu.memory_space<vmem>>, vector<1x1xf32>
    tpu.vector_store %arg6[%c0_21, %c0_22], %32 {strides = array<i32>} : memref<1x1xf32, #tpu.memory_space<vmem>>, vector<1x1xf32>,
    %c0_i32_23 = arith.constant 0 : i32
    %34 = arith.cmpi eq, %arg0, %c0_i32_23 : i32
    %35 = arith.extui %34 : i1 to i32
    %c0_i32_24 = arith.constant 0 : i32
    %36 = arith.cmpi ne, %35, %c0_i32_24 : i32
    scf.if %36 {
      %c0_25 = arith.constant 0 : index
      %c0_26 = arith.constant 0 : index
      %37 = vector.load %arg4[%c0_25, %c0_26] : memref<1x16xi32, #tpu.memory_space<vmem>>, vector<1x16xi32>
      %38 = arith.sitofp %37 : vector<1x16xi32> to vector<1x16xf32>
      %c0_27 = arith.constant 0 : index
      %c0_28 = arith.constant 0 : index
      %39 = vector.load %arg5[%c0_27, %c0_28] : memref<1x16xi32, #tpu.memory_space<vmem>>, vector<1x16xi32>
      %40 = arith.sitofp %39 : vector<1x16xi32> to vector<1x16xf32>
      %cst_29 = arith.constant 0.000000e+00 : f32
      %41 = vector.broadcast %cst_29 : f32 to vector<1x16xf32>
      %42 = arith.cmpf ogt, %40, %41 : vector<1x16xf32>
      %cst_30 = arith.constant 1.000000e+00 : f32
      %43 = vector.broadcast %cst_30 : f32 to vector<1x16xf32>
      %44 = arith.maximumf %40, %43 : vector<1x16xf32>
      %45 = arith.divf %38, %44 : vector<1x16xf32>
      %cst_31 = arith.constant 0.000000e+00 : f32
      %46 = vector.broadcast %cst_31 : f32 to vector<1x16xf32>
      %47 = arith.select %42, %45, %46 : vector<1x16xi1>, vector<1x16xf32>
      %48 = vector.shape_cast %47 : vector<1x16xf32> to vector<1x1x16xf32>
      %cst_32 = arith.constant dense<0.000000e+00> : vector<1xf32>
      %49 = vector.multi_reduction <add>, %48, %cst_32 [1, 2] : vector<1x1x16xf32> to vector<1xf32>
      %50 = vector.shape_cast %49 : vector<1xf32> to vector<1x1x1xf32>
      %51 = vector.extract %50[0, 0, 0] : f32 from vector<1x1x1xf32>
      %cst_33 = arith.constant 1.600000e+01 : f32
      %52 = arith.divf %51, %cst_33 : f32
      %53 = vector.shape_cast %38 : vector<1x16xf32> to vector<1x1x16xf32>
      %cst_34 = arith.constant dense<0.000000e+00> : vector<1xf32>
      %54 = vector.multi_reduction <add>, %53, %cst_34 [1, 2] : vector<1x1x16xf32> to vector<1xf32>
      %55 = vector.shape_cast %54 : vector<1xf32> to vector<1x1x1xf32>
      %56 = vector.extract %55[0, 0, 0] : f32 from vector<1x1x1xf32>
      %57 = vector.shape_cast %40 : vector<1x16xf32> to vector<1x1x16xf32>
      %cst_35 = arith.constant dense<0.000000e+00> : vector<1xf32>
      %58 = vector.multi_reduction <add>, %57, %cst_35 [1, 2] : vector<1x1x16xf32> to vector<1xf32>
      %59 = vector.shape_cast %58 : vector<1xf32> to vector<1x1x1xf32>
      %60 = vector.extract %59[0, 0, 0] : f32 from vector<1x1x1xf32>
      %cst_36 = arith.constant 0.000000e+00 : f32
      %61 = arith.cmpf ogt, %60, %cst_36 : f32
      %cst_37 = arith.constant 1.000000e+00 : f32
      %62 = arith.maximumf %60, %cst_37 : f32
      %63 = arith.divf %56, %62 : f32
      %cst_38 = arith.constant 0.000000e+00 : f32
      %64 = arith.select %61, %63, %cst_38 : f32
      %c0_39 = arith.constant 0 : index
      %c0_40 = arith.constant 0 : index
      %65 = vector.load %arg6[%c0_39, %c0_40] : memref<1x1xf32, #tpu.memory_space<vmem>>, vector<1x1xf32>
      %66 = vector.shape_cast %65 : vector<1x1xf32> to vector<1x1x1xf32>
      %cst_41 = arith.constant dense<0.000000e+00> : vector<1xf32>
      %67 = vector.multi_reduction <add>, %66, %cst_41 [1, 2] : vector<1x1x1xf32> to vector<1xf32>
      %68 = vector.shape_cast %67 : vector<1xf32> to vector<1x1x1xf32>
      %69 = vector.extract %68[0, 0, 0] : f32 from vector<1x1x1xf32>
      %cst_42 = arith.constant 8.000000e+00 : f32
      %70 = arith.divf %69, %cst_42 : f32
      %c0_43 = arith.constant 0 : index
      %71 = memref.load %arg3[%c0_43] : memref<3xf32, #tpu.memory_space<smem>>
      memref.store %52, %arg3[%c0_43] : memref<3xf32, #tpu.memory_space<smem>>
      %c1 = arith.constant 1 : index
      %72 = memref.load %arg3[%c1] : memref<3xf32, #tpu.memory_space<smem>>
      memref.store %64, %arg3[%c1] : memref<3xf32, #tpu.memory_space<smem>>
      %c2 = arith.constant 2 : index
      %73 = memref.load %arg3[%c2] : memref<3xf32, #tpu.memory_space<smem>>
      memref.store %70, %arg3[%c2] : memref<3xf32, #tpu.memory_space<smem>>
    } else {
    }
    return
  }
  func.func @transform_0(%arg0: i32) -> (i32, i32) {
    %c0_i32 = arith.constant 0 : i32
    %c0_i32_0 = arith.constant 0 : i32
    return %arg0, %c0_i32 : i32, i32
  }
  func.func @transform_1(%arg0: i32) -> (i32, i32) {
    %c0_i32 = arith.constant 0 : i32
    %c0_i32_0 = arith.constant 0 : i32
    return %arg0, %c0_i32 : i32, i32
  }
  func.func @transform_2(%arg0: i32) -> i32 {
    %c0_i32 = arith.constant 0 : i32
    %c0_i32_0 = arith.constant 0 : i32
    return %c0_i32 : i32
  }
}

</mosaic_0001>

<bundles_post_ra>
// kernel: tpu_custom_call.1
= control target key start
LH: loop header
LB: loop body
LE: loop exit
PB: predicated region body
PF: predicated region fallthrough
CT: control target
= control target key end

     0   :  { %7 = vsyncpa [#allocation6], 0  ;;  %s305_s0 = inlined_call_operand.hbm [shape: s32[8,16], index: 0, kind: input, shape index: {}]   ;;  %s306_s1 = inlined_call_operand.hbm [shape: s32[8,16], index: 1, kind: input, shape index: {}]   ;;  %s307_s2 = inlined_call_operand.hbm [shape: f32[3], index: 2, kind: output, shape index: {}]  }
   0x1   :  { %8 = vsyncpa [#allocation9], 0 }
   0x2   :  { %9 = vsyncpa [#allocation7], 0  ;;  %s266_s9 = smov [#allocation5]   ;;  %s267_s11 = smov [#allocation8]  }
   0x3   :  { %s16_s10 = sshll.u32 %s266_s9, 4  ;;  %s26_s12 = sshll.u32 %s267_s11, 4  ;;  %s17_s10 = int_to_ptr.vmem [resolvable:$true] %s16_s10  ;;  %s27_s12 = int_to_ptr.vmem [resolvable:$true] %s26_s12 }
   0x4   :  { %s220_s13 = scalar_lea.vmem %s17_s10, 128  ;;  %p225_p1 = scmp.lt.s32.totalorder %s17_s10, %s17_s10 }
   0x5   :  { %p221_p0 = scmp.ne.s32.totalorder %s17_s10, %s220_s13  ;;  %p226_p2 = scmp.lt.s32.totalorder %s220_s13, %s220_s13 }
   0x7   :  { %p227_p3 = por %p226_p2, %p225_p1 }
   0x9   :  { %p228_p4 = pnand %p227_p3, %p221_p0 }
   0xb   :  { %231 = shalt.err (!%p228_p4)
}
   0xc   :  { %19 = dma.hbm_to_vmem [thread:$0]  %s305_s0, 128, %s17_s10, [#allocation6]  }
   0xd   :  { %s240_s16 = scalar_lea.vmem %s27_s12, 128  ;;  %p245_p6 = scmp.lt.s32.totalorder %s27_s12, %s27_s12 }
   0xe   :  { %p241_p5 = scmp.ne.s32.totalorder %s27_s12, %s240_s16  ;;  %p246_p7 = scmp.lt.s32.totalorder %s240_s16, %s240_s16 }
  0x10   :  { %p247_p8 = por %p246_p7, %p245_p6 }
  0x12   :  { %p248_p9 = pnand %p247_p8, %p241_p5 }
  0x14   :  { %251 = shalt.err (!%p248_p9)
}
  0x15   :  { %29 = dma.hbm_to_vmem [thread:$0]  %s306_s1, 128, %s27_s12, [#allocation9]  }
  0x16   :  { %260 = dma.done.wait [#allocation6], 128  }
  0x17   :  { %261 = vsyncadd [#allocation6], 4294967168 }
  0x18   :  { %262 = dma.done.wait [#allocation9], 128  }
  0x19   :  { %263 = vsyncadd [#allocation9], 4294967168  ;;  %vm40_vm0 = vcmask 122880   ;;  %v268_v0 = vmov 0   ;;  %vm49_vm1 = vcmask 130048   ;;  %v45_v1 = vld [vmem:[#allocation5] sm:$0xff] }
  0x1a   :  { %42 = vst.msk [vmem:[#allocation3] sm:$0x1] %vm40_vm0, %v268_v0  ;;  %41 = vst.msk [vmem:[#allocation2] sm:$0x1] %vm40_vm0, %v268_v0  ;;  %v46_v2 = vld [vmem:[#allocation8] sm:$0xff]  ;;  %v61_v4 = vsel %vm49_vm1, %v45_v1, 0 }
  0x1b   :  { %v47_v3 = vmul.u32 %v46_v2, %v45_v1  ;;  %v62_v5 = vrot.slane %v61_v4, 4  ;;  %v84_v23 = vshrl.u32 %v61_v4, 16  ;;  %v83_v36 = vand.u32 65535, %v61_v4  ;;  %s270_s21 = smov 1.0   ;;  %s271_s27 = smov [#allocation10]  }
  0x1c   :  { %vm43_vm3 = vcmask 0   ;;  %v269_v41 = vmov 0.0  }
  0x1d   :  { %v50_v6 = vsel %vm49_vm1, %v47_v3, 0  ;;  %v63_v8 = vadd.s32 %v62_v5, %v61_v4  ;;  %v86_v27 = vcvt.s32.f32 %v84_v23  ;;  %v85_v38 = vcvt.s32.f32 %v83_v36  ;;  %44 = vst.msk [vmem:[#allocation4] sm:$0x1] %vm43_vm3, %v269_v41 }
  0x1e   :  { %v51_v7 = vrot.slane %v50_v6, 4  ;;  %v71_v28 = vshrl.u32 %v50_v6, 16  ;;  %v70_v39 = vand.u32 65535, %v50_v6 }
  0x1f   :  { %v64_v10 = vrot.slane %v63_v8, 2 }
  0x20   :  { %v52_v9 = vadd.s32 %v51_v7, %v50_v6  ;;  %v73_v29 = vcvt.s32.f32 %v71_v28  ;;  %v72_v40 = vcvt.s32.f32 %v70_v39 }
  0x21   :  { %v65_v12 = vadd.s32 %v64_v10, %v63_v8  ;;  %v60_v15 = vld [vmem:[#allocation3] sm:$0x1]  ;;  %v48_v18 = vld [vmem:[#allocation2] sm:$0x1] }
  0x22   :  { %v53_v11 = vrot.slane %v52_v9, 2 }
  0x23   :  { %v66_v14 = vrot.slane %v65_v12, 1 }
  0x24   :  { %v54_v13 = vadd.s32 %v53_v11, %v52_v9 }
  0x25   :  { %v67_v17 = vadd.s32 %v66_v14, %v65_v12 }
  0x26   :  { %v55_v16 = vrot.slane %v54_v13, 1 }
  0x27   :  { %v68_v20 = vadd.s32 %v67_v17, %v60_v15 }
  0x28   :  { %v56_v19 = vadd.s32 %v55_v16, %v54_v13 }
  0x29   :  { %69 = vst.msk [vmem:[#allocation3] sm:$0x1] %vm40_vm0, %v68_v20 }
  0x2a   :  { %v57_v21 = vadd.s32 %v56_v19, %v48_v18 }
  0x2c   :  { %59 = vst.msk [vmem:[#allocation2] sm:$0x1] %vm40_vm0, %v57_v21 }
  0x30   :  { %v116_v22 = vld [vmem:[#allocation3] sm:$0x1] }
  0x31   :  { %v117_v24 = vcvt.s32.f32 %v116_v22  ;;  %v101_v22 = vld [vmem:[#allocation4] sm:$0x1] }
  0x33   :  { %v146_v25 = vsel %vm40_vm0, %v117_v24, 0.0  ;;  %v119_v26 = vmax.f32 %v117_v24, 1.0  ;;  %v114_v30 = vld [vmem:[#allocation2] sm:$0x1]  ;;  %vm118_vm2 = vcmp.gt.f32.partialorder %v117_v24, 0.0 }
  0x34   :  { %147 = vadd.xlane.f32.xlu1 %v146_v25  ;;  %v115_v31 = vcvt.s32.f32 %v114_v30 }
  0x35   :  { %206 = vrcp.f32 %v119_v26 }
  0x36   :  { %v136_v37 = vsel %vm40_vm0, %v115_v31, 0.0 }
  0x38   :  { %89 = vadd.xlane.f32.xlu1 %v86_v27 }
  0x3c   :  { %76 = vadd.xlane.f32.xlu1 %v73_v29 }
  0x42   :  { %v207_v32 = vpop.eup %206 }
  0x43   :  { %v121_v33 = vmul.f32 %v207_v32, %v115_v31 }
  0x45   :  { %v122_v34 = vsel %vm118_vm2, %v121_v33, 0.0 }
  0x46   :  { %v123_v35 = vsel %vm40_vm0, %v122_v34, 0.0 }
  0x47   :  { %124 = vadd.xlane.f32.xlu0 %v123_v35 }
  0x4b   :  { %137 = vadd.xlane.f32.xlu0 %v136_v37 }
  0x4f   :  { %87 = vadd.xlane.f32.xlu0 %v85_v38 }
  0x53   :  { %74 = vadd.xlane.f32.xlu0 %v72_v40 }
  0xbd   :  { %v148_v42 = vpop.xlane.xlu1 %147 }
  0xbe   :  { %v149_v43 = vrot.slane %v148_v42, 4 }
  0xc0   :  { %v150_v44 = vadd.f32 %v149_v43, %v148_v42 }
  0xc1   :  { %v90_v46 = vpop.xlane.xlu1 %89 }
  0xc2   :  { %v92_v49 = vcvt.f32.s32 %v90_v46  ;;  %v151_v50 = vrot.slane %v150_v44, 2 }
  0xc4   :  { %v93_v55 = vshll.u32 %v92_v49, 16  ;;  %v152_v58 = vadd.f32 %v151_v50, %v150_v44 }
  0xc5   :  { %v77_v2 = vpop.xlane.xlu1 %76 }
  0xc6   :  { %v153_v1 = vrot.slane %v152_v58, 1  ;;  %v79_v7 = vcvt.f32.s32 %v77_v2 }
  0xc8   :  { %v154_v8 = vadd.f32 %v153_v1, %v152_v58  ;;  %v80_v10 = vshll.u32 %v79_v7, 16 }
  0xd0   :  { %v125_v45 = vpop.xlane.xlu0 %124 }
  0xd1   :  { %v126_v47 = vrot.slane %v125_v45, 4 }
  0xd3   :  { %v127_v48 = vadd.f32 %v126_v47, %v125_v45 }
  0xd4   :  { %v138_v51 = vpop.xlane.xlu0 %137 }
  0xd5   :  { %v128_v52 = vrot.slane %v127_v48, 2  ;;  %v139_v53 = vrot.slane %v138_v51, 4 }
  0xd7   :  { %v140_v54 = vadd.f32 %v139_v53, %v138_v51  ;;  %v129_v56 = vadd.f32 %v128_v52, %v127_v48 }
  0xd8   :  { %v88_v57 = vpop.xlane.xlu0 %87 }
  0xd9   :  { %v141_v59 = vrot.slane %v140_v54, 2  ;;  %v130_v60 = vrot.slane %v129_v56, 1  ;;  %v91_v61 = vcvt.f32.s32 %v88_v57 }
  0xdb   :  { %v131_v62 = vadd.f32 %v130_v60, %v129_v56  ;;  %v94_v63 = vadd.s32 %v93_v55, %v91_v61  ;;  %v142_v0 = vadd.f32 %v141_v59, %v140_v54 }
  0xdc   :  { %v75_v9 = vpop.xlane.xlu0 %74 }
  0xdd   :  { %190 = vpush %v131_v62  ;;  %v95_v3 = vcvt.s32.f32 %v94_v63  ;;  %v143_v4 = vrot.slane %v142_v0, 1  ;;  %v78_v11 = vcvt.f32.s32 %v75_v9 }
  0xdf   :  { %v97_v5 = vmax.f32 %v95_v3, 1.0  ;;  %v144_v6 = vadd.f32 %v143_v4, %v142_v0  ;;  %v81_v12 = vadd.s32 %v80_v10, %v78_v11  ;;  %vm96_vm4 = vcmp.gt.f32.partialorder %v95_v3, 0.0 }
  0xe1   :  { %208 = vrcp.f32 %v97_v5  ;;  %192 = vpush %v144_v6  ;;  %v82_v13 = vcvt.s32.f32 %v81_v12 }
  0xe2   :  { %194 = vpush %v154_v8 }
  0xee   :  { %v209_v14 = vpop.eup %208 }
  0xef   :  { %v99_v15 = vmul.f32 %v209_v14, %v82_v13 }
  0xf1   :  { %v100_v16 = vsel %vm96_vm4, %v99_v15, 0.0 }
  0xf2   :  { %v102_v17 = vrot.slane %v100_v16, 4 }
  0xf4   :  { %v103_v18 = vadd.f32 %v102_v17, %v100_v16 }
  0xf6   :  { %v104_v19 = vrot.slane %v103_v18, 2 }
  0xf8   :  { %v105_v20 = vadd.f32 %v104_v19, %v103_v18 }
  0xfa   :  { %v106_v21 = vrot.slane %v105_v20, 1 }
  0xfc   :  { %v107_v23 = vadd.f32 %v106_v21, %v105_v20 }
  0xfe   :  { %v108_v24 = vadd.f32 %v107_v23, %v101_v22 }
 0x100   :  { %110 = vst.msk [vmem:[#allocation4] sm:$0x1] %vm43_vm3, %v108_v24 }
 0x107   :  { %v163_v27 = vld [vmem:[#allocation4] sm:$0x1] }
 0x10e   :  { %s191_s0 = spop %190 }
 0x10f   :  { %s135_s1 = smul.f32 0.0625, %s191_s0 }
 0x111   :  { %170 = sst [smem:[#allocation10]] %s135_s1 }
 0x112   :  { %s193_s19 = spop %192 }
 0x113   :  { %s195_s20 = spop %194 }
 0x114   :  { %s157_s22 = smax.f32 %s270_s21, %s195_s20  ;;  %p156_p10 = scmp.gt.f32.partialorder %s195_s20, 0.0 }
 0x115   :  { %v158_v25 = vstv %s157_s22 }
 0x116   :  { %210 = vrcp.f32 %v158_v25 }
 0x123   :  { %v211_v26 = vpop.eup %210 }
 0x124   :  { %196 = vpush %v211_v26 }
 0x125   :  { %198 = vpush %v163_v27 }
 0x155   :  { %s197_s23 = spop %196 }
 0x156   :  { %s161_s24 = smul.f32 %s197_s23, %s193_s19  ;;  %s199_s25 = spop %198 }
 0x157   :  { %s168_s26 = smul.f32 0.125, %s199_s25 }
 0x158   :  { %s309_s24 = smov (!%p156_p10, %s161_s24), 0.0 }
 0x159   :  { %174 = sst [smem:[#allocation10 + $0x2]] %s168_s26 }
 0x15a   :  { %172 = sst [smem:[#allocation10 + $0x1]] %s309_s24 }
 0x15b   :  { %182 = dma.smem_to_hbm %s271_s27, 16, %s307_s2, [#allocation7]  }
 0x15c   :  { %264 = dma.done.wait [#allocation7], 16  }
 0x15d   :  { %265 = vsyncadd [#allocation7], 4294967280 }
 0x15e   :  { %186 = sfence }
 0x15f   :  { %187 = vsyncpa [#allocation6], 1 }
 0x160   :  { %188 = vsyncpa [#allocation9], 1 }
 0x161   :  { %189 = vsyncpa [#allocation7], 1 }

</bundles_post_ra>
